<compile_context>
chip_gen: v7x
topology: tpu7x:2x2x1
jax: 0.10.0
libtpu: 0.0.40
codegen_flags: <defaults>
</compile_context>

<pallas_src>
import jax
import jax.numpy as jnp
from jax.experimental import pallas as pl
from jax.experimental.pallas import tpu as pltpu

LN_EPS = 1e-12  # config.layer_norm_eps


def bert_self_output_kernel(h_ref, res_ref, w_ref, p_ref, out_ref):
    # h_ref/res_ref: (bm, H) row tiles; w_ref: (H, H) bf16; p_ref: (3, H) f32
    # p_ref rows: 0 = dense bias, 1 = LN gamma, 2 = LN beta
    x = h_ref[...]
    res = res_ref[...].astype(jnp.float32)
    p = p_ref[...]

    # dense(hidden_states): bf16 MXU inputs, f32 accumulation
    y = jnp.dot(x.astype(jnp.bfloat16), w_ref[...],
                preferred_element_type=jnp.float32)
    # + bias; dropout is identity in eval mode; + residual
    y = y + p[0:1, :] + res

    # LayerNorm over the hidden dim (f32 statistics, rsqrt on the EUP)
    mu = jnp.mean(y, axis=-1, keepdims=True)
    c = y - mu
    var = jnp.mean(c * c, axis=-1, keepdims=True)
    out = (c * jax.lax.rsqrt(var + LN_EPS)) * p[1:2, :] + p[2:3, :]
    out_ref[...] = out.astype(out_ref.dtype)


def _pick_block_m(M, H, act_bytes, out_bytes, budget_bytes):
    """Largest row tile such that double-buffered x/r/out + params fit `budget_bytes`."""
    per_row = 2 * H * act_bytes * 2 + 2 * H * out_bytes   # x, r, out (double-buffered)
    fixed = H * H * 2 + 3 * H * 4                         # bf16 weight + (3,H) f32 (single-buffered)
    bm = max(8, (budget_bytes - fixed) // per_row)
    bm = min(int(bm), 4096)
    return (bm // 8) * 8


def bert_self_output(hidden_states, input_tensor, params, *,
                     block_m=None, vmem_budget_bytes=36 << 20):
    """hidden_states, input_tensor: (B, S, H). Returns (B, S, H) in hidden_states.dtype."""
    B, S, H = hidden_states.shape
    M = B * S
    # Free metadata reshape; no dtype cast (DMA activations in native dtype).
    x = hidden_states.reshape(M, H)
    r = input_tensor.reshape(M, H)
    out_dtype = hidden_states.dtype

    if block_m is None:
        block_m = _pick_block_m(M, H, x.dtype.itemsize,
                                jnp.dtype(out_dtype).itemsize, vmem_budget_bytes)
    if M <= block_m:
        bm = M                      # single grid step, block == full array dims
    else:
        bm = max(8, (block_m // 8) * 8)   # sublane-aligned partial-coverage blocks
    grid = (pl.cdiv(M, bm),)        # ragged last block handled by Pallas

    row_spec = pl.BlockSpec((bm, H), lambda i: (i, 0))
    w_spec = pl.BlockSpec((H, H), lambda i: (0, 0), pipeline_mode=pl.Buffered(1))
    p_spec = pl.BlockSpec((3, H), lambda i: (0, 0), pipeline_mode=pl.Buffered(1))

    out = pl.pallas_call(
        bert_self_output_kernel,
        out_shape=jax.ShapeDtypeStruct((M, H), out_dtype),
        grid=grid,
        in_specs=[row_spec, row_spec, w_spec, p_spec],
        out_specs=row_spec,
        compiler_params=pltpu.CompilerParams(
            dimension_semantics=("parallel",),
            vmem_limit_bytes=48 << 20,   # explicit; also safe on v7x (64 MiB part)
        ),
    )(x, r, params["w"], params["bgb"])

    return out.reshape(B, S, H)


def init_params(key, hidden_size):
    """Deterministic synthetic parameters. Linear weight stored (in, out) = torch weight.T."""
    kw, kb = jax.random.split(key)
    std = 0.02
    w = std * jax.random.normal(kw, (hidden_size, hidden_size), jnp.float32)
    b = std * jax.random.normal(kb, (hidden_size,), jnp.float32)
    gamma = jnp.ones((hidden_size,), jnp.float32)
    beta = jnp.zeros((hidden_size,), jnp.float32)
    return {
        "w": w.astype(jnp.bfloat16),          # MXU operand (f32 accumulation in-kernel)
        "w_f32": w,                           # full-precision copy for the reference
        "bgb": jnp.stack([b, gamma, beta]),   # (3, H) packed bias / gamma / beta, f32
    }


def reference(hidden_states, input_tensor, params):
    """Pure-JAX f32 reference matching the PyTorch module (eval mode)."""
    b, gamma, beta = params["bgb"][0], params["bgb"][1], params["bgb"][2]
    y = hidden_states @ params["w_f32"] + b
    y = y + input_tensor
    mu = jnp.mean(y, axis=-1, keepdims=True)
    var = jnp.mean((y - mu) ** 2, axis=-1, keepdims=True)
    return (y - mu) * jax.lax.rsqrt(var + LN_EPS) * gamma + beta


if __name__ == "__main__":
    # config: hidden_size=48, layer_norm_eps=1e-12; dropout is eval-mode identity
    B, S, H = 2, 8, 48

    key = jax.random.PRNGKey(0)
    k_h, k_r, k_p = jax.random.split(key, 3)

    hidden_states = jax.random.normal(k_h, (B, S, H), jnp.float32)
    input_tensor = jax.random.normal(k_r, (B, S, H), jnp.float32)
    params = init_params(k_p, H)

    # main shape: single grid step
    out = bert_self_output(hidden_states, input_tensor, params)
    jax.block_until_ready(out)
    assert out.shape == (B, S, H)
    ref = reference(hidden_states, input_tensor, params)
    err = float(jnp.max(jnp.abs(out - ref)))
    assert jnp.allclose(out, ref, atol=2e-2, rtol=2e-2), err  # bf16 MXU path

    # ragged-grid path: M=21 rows with a forced 8-row tile (last block partial)
    B2, S2 = 3, 7
    h2 = jax.random.normal(jax.random.PRNGKey(1), (B2, S2, H), jnp.float32)
    r2 = jax.random.normal(jax.random.PRNGKey(2), (B2, S2, H), jnp.float32)
    out2 = bert_self_output(h2, r2, params, block_m=8)
    jax.block_until_ready(out2)
    ref2 = reference(h2, r2, params)
    err2 = float(jnp.max(jnp.abs(out2 - ref2)))
    assert jnp.allclose(out2, ref2, atol=2e-2, rtol=2e-2), err2

    print("KERNEL_OK")
</pallas_src>

<mosaic_0001>
module attributes {stable_mosaic.version = 11 : i64} {
  func.func @bert_self_output_kernel(%arg0: i32, %arg1: memref<16x48xf32, #tpu.memory_space<vmem>>, %arg2: memref<16x48xf32, #tpu.memory_space<vmem>>, %arg3: memref<48x48xbf16, #tpu.memory_space<vmem>>, %arg4: memref<3x48xf32, #tpu.memory_space<vmem>>, %arg5: memref<16x48xf32, #tpu.memory_space<vmem>>) attributes {dimension_semantics = [#tpu.dimension_semantics<parallel>], iteration_bounds = array<i64: 1>, scalar_prefetch = 0 : i64, scratch_operands = 0 : i64, tpu.core_type = #tpu.core_type<tc>, window_params = [{transform_indices = @transform_0, window_bounds = array<i64: 16, 48>}, {transform_indices = @transform_1, window_bounds = array<i64: 16, 48>}, {pipeline_mode = #tpu.pipeline_mode<synchronous>, transform_indices = @transform_2, window_bounds = array<i64: 48, 48>}, {pipeline_mode = #tpu.pipeline_mode<synchronous>, transform_indices = @transform_3, window_bounds = array<i64: 3, 48>}, {transform_indices = @transform_4, window_bounds = array<i64: 16, 48>}]} {
    %c0 = arith.constant 0 : index
    %c0_0 = arith.constant 0 : index
    %0 = vector.load %arg1[%c0, %c0_0] : memref<16x48xf32, #tpu.memory_space<vmem>>, vector<16x48xf32>
    %c0_1 = arith.constant 0 : index
    %c0_2 = arith.constant 0 : index
    %1 = vector.load %arg2[%c0_1, %c0_2] : memref<16x48xf32, #tpu.memory_space<vmem>>, vector<16x48xf32>
    %c0_3 = arith.constant 0 : index
    %c0_4 = arith.constant 0 : index
    %2 = vector.load %arg4[%c0_3, %c0_4] : memref<3x48xf32, #tpu.memory_space<vmem>>, vector<3x48xf32>
    %3 = arith.truncf %0 : vector<16x48xf32> to vector<16x48xbf16>
    %c0_5 = arith.constant 0 : index
    %c0_6 = arith.constant 0 : index
    %4 = vector.load %arg3[%c0_5, %c0_6] : memref<48x48xbf16, #tpu.memory_space<vmem>>, vector<48x48xbf16>
    %cst = arith.constant dense<0.000000e+00> : vector<16x48xf32>
    %5 = tpu.matmul %3, %4, %cst {dimension_numbers = #tpu.dot_dimension_numbers<[1], [0], [0], [1], [0, 0, 1, 1], [], []>} : vector<16x48xbf16>, vector<48x48xbf16>, vector<16x48xf32> -> vector<16x48xf32>
    %6 = vector.extract_strided_slice %2 {offsets = [0, 0], sizes = [1, 48], strides = [1, 1]} : vector<3x48xf32> to vector<1x48xf32>
    %7 = vector.broadcast %6 : vector<1x48xf32> to vector<16x48xf32>
    %8 = arith.addf %5, %7 : vector<16x48xf32>
    %9 = arith.addf %8, %1 : vector<16x48xf32>
    %cst_7 = arith.constant dense<0.000000e+00> : vector<16xf32>
    %10 = vector.multi_reduction <add>, %9, %cst_7 [1] : vector<16x48xf32> to vector<16xf32>
    %11 = vector.shape_cast %10 : vector<16xf32> to vector<16x1xf32>
    %cst_8 = arith.constant 4.800000e+01 : f32
    %12 = vector.broadcast %cst_8 : f32 to vector<16x1xf32>
    %13 = arith.divf %11, %12 : vector<16x1xf32>
    %14 = vector.broadcast %13 : vector<16x1xf32> to vector<16x48xf32>
    %15 = arith.subf %9, %14 : vector<16x48xf32>
    %16 = arith.mulf %15, %15 : vector<16x48xf32>
    %cst_9 = arith.constant dense<0.000000e+00> : vector<16xf32>
    %17 = vector.multi_reduction <add>, %16, %cst_9 [1] : vector<16x48xf32> to vector<16xf32>
    %18 = vector.shape_cast %17 : vector<16xf32> to vector<16x1xf32>
    %cst_10 = arith.constant 4.800000e+01 : f32
    %19 = vector.broadcast %cst_10 : f32 to vector<16x1xf32>
    %20 = arith.divf %18, %19 : vector<16x1xf32>
    %cst_11 = arith.constant 9.99999996E-13 : f32
    %21 = vector.broadcast %cst_11 : f32 to vector<16x1xf32>
    %22 = arith.addf %20, %21 : vector<16x1xf32>
    %23 = math.rsqrt %22 : vector<16x1xf32>
    %24 = vector.broadcast %23 : vector<16x1xf32> to vector<16x48xf32>
    %25 = arith.mulf %15, %24 : vector<16x48xf32>
    %26 = vector.extract_strided_slice %2 {offsets = [1, 0], sizes = [1, 48], strides = [1, 1]} : vector<3x48xf32> to vector<1x48xf32>
    %27 = vector.broadcast %26 : vector<1x48xf32> to vector<16x48xf32>
    %28 = arith.mulf %25, %27 : vector<16x48xf32>
    %29 = vector.extract_strided_slice %2 {offsets = [2, 0], sizes = [1, 48], strides = [1, 1]} : vector<3x48xf32> to vector<1x48xf32>
    %30 = vector.broadcast %29 : vector<1x48xf32> to vector<16x48xf32>
    %31 = arith.addf %28, %30 : vector<16x48xf32>
    %c0_12 = arith.constant 0 : index
    %c0_13 = arith.constant 0 : index
    %32 = vector.load %arg5[%c0_12, %c0_13] : memref<16x48xf32, #tpu.memory_space<vmem>>, vector<16x48xf32>
    tpu.vector_store %arg5[%c0_12, %c0_13], %31 {strides = array<i32>} : memref<16x48xf32, #tpu.memory_space<vmem>>, vector<16x48xf32>,
    return
  }
  func.func @transform_0(%arg0: i32) -> (i32, i32) {
    %c0_i32 = arith.constant 0 : i32
    %c0_i32_0 = arith.constant 0 : i32
    return %arg0, %c0_i32 : i32, i32
  }
  func.func @transform_1(%arg0: i32) -> (i32, i32) {
    %c0_i32 = arith.constant 0 : i32
    %c0_i32_0 = arith.constant 0 : i32
    return %arg0, %c0_i32 : i32, i32
  }
  func.func @transform_2(%arg0: i32) -> (i32, i32) {
    %c0_i32 = arith.constant 0 : i32
    %c0_i32_0 = arith.constant 0 : i32
    %c0_i32_1 = arith.constant 0 : i32
    return %c0_i32, %c0_i32_0 : i32, i32
  }
  func.func @transform_3(%arg0: i32) -> (i32, i32) {
    %c0_i32 = arith.constant 0 : i32
    %c0_i32_0 = arith.constant 0 : i32
    %c0_i32_1 = arith.constant 0 : i32
    return %c0_i32, %c0_i32_0 : i32, i32
  }
  func.func @transform_4(%arg0: i32) -> (i32, i32) {
    %c0_i32 = arith.constant 0 : i32
    %c0_i32_0 = arith.constant 0 : i32
    return %arg0, %c0_i32 : i32, i32
  }
}

</mosaic_0001>

<bundles_post_ra>
// kernel: tpu_custom_call.1
= control target key start
LH: loop header
LB: loop body
LE: loop exit
PB: predicated region body
PF: predicated region fallthrough
CT: control target
= control target key end

     0   :  { %9 = vsyncpa [#allocation3], 0  ;;  %s438_s0 = inlined_call_operand.hbm [shape: f32[16,48], index: 0, kind: input, shape index: {}]   ;;  %s439_s1 = inlined_call_operand.hbm [shape: f32[16,48], index: 1, kind: input, shape index: {}]   ;;  %s440_s2 = inlined_call_operand.hbm [shape: bf16[48,48], index: 2, kind: input, shape index: {}]   ;;  %s441_s3 = inlined_call_operand.vmem [shape: f32[3,48], index: 3, kind: input, shape index: {}]   ;;  %s442_s4 = inlined_call_operand.hbm [shape: f32[16,48], index: 4, kind: output, shape index: {}]  }
   0x1   :  { %10 = vsyncpa [#allocation6], 0 }
   0x2   :  { %11 = vsyncpa [#allocation4], 0  ;;  %s329_s15 = smov [#allocation5]   ;;  %s330_s17 = smov [#allocation2]  }
   0x3   :  { %s29_s16 = sshll.u32 %s329_s15, 4  ;;  %s17_s18 = sshll.u32 %s330_s17, 4  ;;  %s30_s16 = int_to_ptr.vmem [resolvable:$true] %s29_s16  ;;  %s364_s18 = int_to_ptr.vmem [resolvable:$true] %s17_s18 }
   0x4   :  { %s235_s21 = scalar_lea.hbm %s439_s1, 256 }
   0x5   :  { %p236_p0 = scmp.ne.s32.totalorder %s439_s1, %s235_s21  ;;  %p239_p1 = scmp.lt.u32.totalorder %s235_s21, %s439_s1 }
   0x7   :  { %p241_p2 = pnand %p239_p1, %p236_p0 }
   0x9   :  { %244 = shalt.err (!%p241_p2)
}
   0xa   :  { %s245_s26 = scalar_lea.vmem %s30_s16, 256  ;;  %p250_p4 = scmp.lt.s32.totalorder %s30_s16, %s30_s16 }
   0xb   :  { %p246_p3 = scmp.ne.s32.totalorder %s30_s16, %s245_s26  ;;  %p251_p5 = scmp.lt.s32.totalorder %s245_s26, %s245_s26 }
   0xd   :  { %p252_p6 = por %p251_p5, %p250_p4 }
   0xf   :  { %p253_p7 = pnand %p252_p6, %p246_p3 }
  0x11   :  { %256 = shalt.err (!%p253_p7)
}
  0x12   :  { %s331_s27 = smov 128   ;;  %s332_s28 = smov 8  }
  0x13   :  { %35 = dma.hbm_to_vmem [thread:$0]  %s439_s1, 256, %s30_s16, [#allocation6], %s331_s27, %s331_s27, %s332_s28  }
  0x14   :  { %s257_s7 = scalar_lea.hbm %s438_s0, 256 }
  0x15   :  { %p258_p8 = scmp.ne.s32.totalorder %s438_s0, %s257_s7  ;;  %p261_p9 = scmp.lt.u32.totalorder %s257_s7, %s438_s0 }
  0x17   :  { %p263_p10 = pnand %p261_p9, %p258_p8 }
  0x19   :  { %266 = shalt.err (!%p263_p10)
}
  0x1a   :  { %s267_s12 = scalar_lea.vmem %s364_s18, 256  ;;  %p272_p12 = scmp.lt.s32.totalorder %s364_s18, %s364_s18 }
  0x1b   :  { %p268_p11 = scmp.ne.s32.totalorder %s364_s18, %s267_s12  ;;  %p273_p13 = scmp.lt.s32.totalorder %s267_s12, %s267_s12 }
  0x1d   :  { %p274_p0 = por %p273_p13, %p272_p12 }
  0x1f   :  { %p275_p1 = pnand %p274_p0, %p268_p11 }
  0x21   :  { %278 = shalt.err (!%p275_p1)
}
  0x22   :  { %23 = dma.hbm_to_vmem [thread:$0]  %s438_s0, 256, %s364_s18, [#allocation3], %s331_s27, %s331_s27, %s332_s28  }
  0x23   :  { %s333_s14 = smov [#allocation7]   ;;  %s279_s19 = scalar_lea.hbm %s440_s2, 384 }
  0x24   :  { %s41_s15 = sshll.u32 %s333_s14, 4  ;;  %p280_p2 = scmp.ne.s32.totalorder %s440_s2, %s279_s19  ;;  %s42_s15 = int_to_ptr.vmem [resolvable:$true] %s41_s15 }
  0x25   :  { %p283_p3 = scmp.lt.u32.totalorder %s279_s19, %s440_s2 }
  0x27   :  { %p285_p4 = pnand %p283_p3, %p280_p2 }
  0x29   :  { %288 = shalt.err (!%p285_p4)
}
  0x2a   :  { %s289_s24 = scalar_lea.vmem %s42_s15, 384  ;;  %p294_p6 = scmp.lt.s32.totalorder %s42_s15, %s42_s15 }
  0x2b   :  { %p290_p5 = scmp.ne.s32.totalorder %s42_s15, %s289_s24  ;;  %p295_p7 = scmp.lt.s32.totalorder %s289_s24, %s289_s24 }
  0x2d   :  { %p296_p8 = por %p295_p7, %p294_p6 }
  0x2f   :  { %p297_p9 = pnand %p296_p8, %p290_p5 }
  0x31   :  { %300 = shalt.err (!%p297_p9)
}
  0x32   :  { %s334_s0 = smov 64   ;;  %s335_s18 = smov 4  }
  0x33   :  { %47 = dma.hbm_to_vmem [thread:$0]  %s440_s2, 384, %s42_s15, [#allocation6], %s334_s0, %s334_s0, %s335_s18  }
  0x34   :  { %323 = dma.done.wait [#allocation3], 256  }
  0x35   :  { %324 = vsyncadd [#allocation3], 4294967040 }
  0x36   :  { %325 = dma.done.wait [#allocation6], 640  }
  0x37   :  { %326 = vsyncadd [#allocation6], 4294966656  ;;  %v336_v0 = vmov 0.0   ;;  %vm337_vm0 = vmmov 0   ;;  %v228_v1 = vld [vmem:[#allocation7] sm:$0xff]   ;;  %v229_v2 = vld [vmem:[#allocation7 + $0x8] sm:$0xff]   ;;  %v72_v7 = vlaneseq }
  0x38   :  { %208 = vmatprep.subr.bf16.mxu0 %v336_v0  ;;  %214 = vmatprep.mubr.msk.bf16.mxu0 %vm337_vm0, %v336_v0  ;;  %v230_v3 = vld [vmem:[#allocation7 + $0x10] sm:$0xff]   ;;  %v60_v4 = vld [vmem:[#allocation2] sm:$0xff]  ;;  %v61_v5 = vld [vmem:[#allocation2 + $0x8] sm:$0xff]  ;;  %vm94_vm1 = vcmask 392192  }
  0x39   :  { %209 = vmatpush3.bf16.msra.mxu0 %v228_v1  ;;  %v65_v6 = vpack.c.bf16 %v61_v5, %v60_v4  ;;  %v73_v8 = vshrl.u32 %v72_v7, 7  ;;  %v64_v10 = vld [vmem:[%s441_s3] sm:$0x7]  ;;  %v62_v13 = vld [vmem:[#allocation5] sm:$0xff]  ;;  %v63_v17 = vld [vmem:[#allocation5 + $0x8] sm:$0xff]  ;;  %s338_s3 = smov [#allocation8]  }
  0x3a   :  { %210 = vmatprep.subr.bf16.mxu0 %v336_v0  ;;  %s187_s30 = sshll.u32 %s338_s3, 4  ;;  %s188_s30 = int_to_ptr.vmem [resolvable:$true] %s187_s30 }
  0x3b   :  { %v74_v9 = vsub.s32 0, %v73_v8  ;;  %v170_v40 = vsub.s32 1, %v73_v8  ;;  %v176_v41 = vsub.s32 2, %v73_v8  ;;  %s301_s5 = scalar_lea.vmem %s188_s30, 256  ;;  %p306_p11 = scmp.lt.s32.totalorder %s188_s30, %s188_s30 }
  0x3c   :  { %p302_p10 = scmp.ne.s32.totalorder %s188_s30, %s301_s5  ;;  %p307_p12 = scmp.lt.s32.totalorder %s301_s5, %s301_s5 }
  0x3d   :  { %211 = vmatpush3.bf16.msra.mxu0 %v229_v2  ;;  %v75_v11 = vrot.slane %v64_v10, %v74_v9  ;;  %v171_v42 = vrot.slane %v64_v10, %v170_v40  ;;  %v177_v44 = vrot.slane %v64_v10, %v176_v41 }
  0x3e   :  { %212 = vmatprep.subr.bf16.mxu0 %v336_v0  ;;  %p308_p13 = por %p307_p12, %p306_p11 }
  0x40   :  { %p309_p0 = pnand %p308_p13, %p302_p10 }
  0x41   :  { %213 = vmatpush3.bf16.msra.mxu0 %v230_v3 }
  0x44   :  { %215 = vmatmul.mubr.msk.bf16.vlgmr.msra.gmra.mrb[0].mxu0 %vm94_vm1, %v65_v6 }
 0x117   :  { %v132_v12 = vpop.f32.mrb[0].mxu0 }
 0x118   :  { %v133_v14 = vadd.f32 %v132_v12, %v75_v11  ;;  %v216_v15 = vpop.f32.mrb[1].mxu0 }
 0x119   :  { %v135_v16 = vpop.f32.mrb[2].mxu0 }
 0x11a   :  { %v136_v18 = vadd.f32 %v135_v16, %v75_v11  ;;  %v217_v19 = vpop.f32.mrb[3].mxu0  ;;  %v139_v20 = vadd.f32 %v133_v14, %v62_v13 }
 0x11c   :  { %v141_v21 = vsel %vm94_vm1, %v139_v20, 0.0  ;;  %v140_v22 = vadd.f32 %v136_v18, %v63_v17 }
 0x11d   :  { %142 = vadd.xlane.f32.xlu0 %v141_v21 }
 0x11e   :  { %v144_v23 = vsel %vm94_vm1, %v140_v22, 0.0 }
 0x121   :  { %145 = vadd.xlane.f32.xlu0 %v144_v23 }
 0x1aa   :  { %v143_v24 = vpop.xlane.xlu0 %142 }
 0x1ab   :  { %v148_v25 = vmul.f32 0.020833334, %v143_v24 }
 0x1ad   :  { %v150_v26 = vsub.f32 %v139_v20, %v148_v25 }
 0x1ae   :  { %v146_v27 = vpop.xlane.xlu0 %145 }
 0x1af   :  { %v149_v28 = vmul.f32 0.020833334, %v146_v27  ;;  %v152_v29 = vmul.f32 %v150_v26, %v150_v26 }
 0x1b1   :  { %v151_v30 = vsub.f32 %v140_v22, %v149_v28  ;;  %v154_v31 = vsel %vm94_vm1, %v152_v29, 0.0 }
 0x1b2   :  { %155 = vadd.xlane.f32.xlu1 %v154_v31 }
 0x1b3   :  { %v153_v32 = vmul.f32 %v151_v30, %v151_v30 }
 0x1b5   :  { %v157_v33 = vsel %vm94_vm1, %v153_v32, 0.0 }
 0x1b6   :  { %158 = vadd.xlane.f32.xlu1 %v157_v33 }
 0x23f   :  { %v156_v34 = vpop.xlane.xlu1 %155 }
 0x240   :  { %v160_v35 = vmul.f32 0.020833334, %v156_v34 }
 0x242   :  { %v162_v36 = vadd.f32 1e-12, %v160_v35 }
 0x243   :  { %v159_v37 = vpop.xlane.xlu1 %158 }
 0x244   :  { %231 = vrsqrt.f32 %v162_v36  ;;  %v161_v38 = vmul.f32 0.020833334, %v159_v37 }
 0x246   :  { %v163_v39 = vadd.f32 1e-12, %v161_v38 }
 0x248   :  { %233 = vrsqrt.f32 %v163_v39 }
 0x24e   :  { %v232_v43 = vpop.eup %231 }
 0x24f   :  { %v166_v45 = vmul.f32 %v232_v43, %v150_v26 }
 0x251   :  { %v172_v46 = vmul.f32 %v171_v42, %v166_v45 }
 0x252   :  { %v234_v47 = vpop.eup %233 }
 0x253   :  { %v167_v48 = vmul.f32 %v234_v47, %v151_v30  ;;  %v178_v49 = vadd.f32 %v177_v44, %v172_v46 }
 0x255   :  { %v173_v50 = vmul.f32 %v171_v42, %v167_v48  ;;  %180 = vst.msk [vmem:[#allocation8] sm:$0xff] %vm94_vm1, %v178_v49 }
 0x257   :  { %v179_v51 = vadd.f32 %v177_v44, %v173_v50 }
 0x259   :  { %181 = vst.msk [vmem:[#allocation8 + $0x8] sm:$0xff] %vm94_vm1, %v179_v51 }
 0x25a   :  { %312 = shalt.err (!%p309_p0)
}
 0x25b   :  { %s313_s8 = scalar_lea.hbm %s442_s4, 256 }
 0x25c   :  { %p314_p1 = scmp.ne.s32.totalorder %s442_s4, %s313_s8  ;;  %p317_p2 = scmp.lt.u32.totalorder %s313_s8, %s442_s4 }
 0x25e   :  { %p319_p3 = pnand %p317_p2, %p314_p1 }
 0x260   :  { %322 = shalt.err (!%p319_p3)
}
 0x261   :  { %193 = dma.vmem_to_hbm [thread:$0]  %s188_s30, 256, %s442_s4, [#allocation4], %s331_s27, %s331_s27, %s332_s28  }
 0x262   :  { %327 = dma.done.wait [#allocation4], 256  }
 0x263   :  { %328 = vsyncadd [#allocation4], 4294967040 }
 0x264   :  { %197 = vsyncpa [#allocation3], 1 }
 0x265   :  { %198 = vsyncpa [#allocation6], 1 }
 0x266   :  { %199 = vsyncpa [#allocation4], 1 }

</bundles_post_ra>
